<compile_context>
chip_gen: v7x
topology: tpu7x:2x2x1
jax: 0.10.0
libtpu: 0.0.40
codegen_flags: <defaults>
</compile_context>

<pallas_src>
import functools

import jax
import jax.numpy as jnp
from jax.experimental import pallas as pl
from jax.experimental.pallas import tpu as pltpu

_MIB = 1024 * 1024


# --------------------------------------------------------------------------
# PE table construction (plain JAX, done once at module init).
# --------------------------------------------------------------------------
def make_positional_encoding(d_model: int, max_len: int = 5000,
                             dtype=jnp.float32) -> jnp.ndarray:
    """(max_len, 1, d_model) sinusoidal table, exactly as the PyTorch module.

    Build it once in the *model* dtype so the forward pass never has to
    re-cast / re-slice it (that would be a whole extra HBM pass per call).
    """
    assert d_model % 2 == 0, "PositionalEncoding requires an even d_model"
    position = jnp.arange(0, max_len, dtype=jnp.float32)[:, None]           # (L, 1)
    div_term = jnp.exp(jnp.arange(0, d_model, 2, dtype=jnp.float32)
                       * -(jnp.log(10000.0) / d_model))                     # (D/2,)
    pe = jnp.zeros((max_len, d_model), dtype=jnp.float32)
    pe = pe.at[:, 0::2].set(jnp.sin(position * div_term))
    pe = pe.at[:, 1::2].set(jnp.cos(position * div_term))
    return pe[:, None, :].astype(dtype)                                     # (L, 1, D)


# --------------------------------------------------------------------------
# Kernels.
# --------------------------------------------------------------------------
def _add_pe_3d_kernel(x_ref, pe_ref, o_ref):
    # x: (ts, B, D) ; pe: (ts, 1, D) -> broadcast over the batch (sublane) axis.
    o_ref[...] = x_ref[...] + pe_ref[...]


def _add_pe_flat_kernel(x_ref, pe_ref, o_ref, *, batch: int):
    # x: (ts, B*D) ; pe: (ts, D).  Lane-dense layout for small B / small D.
    pe = pe_ref[...]
    if batch > 1:
        # Lane-axis replication inside the kernel: VPU/XLU are idle in this
        # memory-bound add, so building the broadcast here is free compared to
        # streaming a pre-tiled pe from HBM.
        pe = jnp.concatenate([pe] * batch, axis=-1)
    o_ref[...] = x_ref[...] + pe


# --------------------------------------------------------------------------
# Tiling heuristics.
# --------------------------------------------------------------------------
def _tpu_vmem_bytes() -> int:
    try:
        return int(getattr(pltpu.get_tpu_info(), "vmem_capacity_bytes",
                           128 * _MIB))
    except Exception:
        return 128 * _MIB           # conservative fallback: treat as v5e/v6e


def _target_block_bytes(vmem_bytes: int) -> int:
    # v7x (64 MiB VMEM, ~3.2 TB/s HBM): bigger blocks to amortize the ~0.35us
    # per-grid-step overhead.  v5e/v6e: 4 MiB is past the knee of the measured
    # f32-add roofline sweep; the explicit vmem_limit below keeps it legal on
    # v5e's smaller default scoped limit.
    return 6 * _MIB if vmem_bytes <= 64 * _MIB else 4 * _MIB


def _auto_seq_tile(S: int, bytes_per_seq_row: int, target_bytes: int) -> int:
    ts = max(1, target_bytes // max(1, bytes_per_seq_row))
    if ts >= 8:
        ts -= ts % 8                # sublane / DMA friendly
    return int(min(ts, S))


# --------------------------------------------------------------------------
# Forward pass.
# --------------------------------------------------------------------------
def positional_encoding_forward(x: jnp.ndarray, pe: jnp.ndarray,
                                tile_s: int | None = None) -> jnp.ndarray:
    """x: (S, B, D) ; pe: (max_len, 1, D) from make_positional_encoding.

    Returns x + pe[:S] (PyTorch semantics).  Pure-functional building block:
    no jit / no input aliasing here -- let the caller's jit decide donation
    (input_output_aliases without donation would force a defensive copy of x).
    """
    S, B, D = x.shape
    L = pe.shape[0]
    assert pe.shape == (L, 1, D), f"pe shape {pe.shape} incompatible with x {x.shape}"
    assert L >= S, "sequence length exceeds max_len of the PE table"
    if pe.dtype != x.dtype:
        # Fallback only -- build the table in the model dtype to avoid this
        # per-call cast (an extra HBM pass over pe).
        pe = pe.astype(x.dtype)

    itemsize = jnp.dtype(x.dtype).itemsize
    vmem_bytes = _tpu_vmem_bytes()
    is_v7x = vmem_bytes <= 64 * _MIB

    # --- pick the sequence tile -------------------------------------------
    if tile_s is None:
        ts = _auto_seq_tile(S, B * D * itemsize, _target_block_bytes(vmem_bytes))
        # v7x megacore: make sure there are >= 2 grid steps so "parallel" can
        # actually shard sequence tiles across its 2 TensorCores.
        if is_v7x and S >= 16 and pl.cdiv(S, ts) < 2:
            ts = min(S, ((-(-S // 2) + 7) // 8) * 8)
    else:
        ts = int(tile_s)
    ts = int(max(1, min(ts, S)))
    if S >= 8:
        # Keep the sublane (sequence) tile 8-aligned; ragged tail is masked.
        ts = max(8, ts)
        if ts % 8 != 0:
            ts = (ts // 8) * 8
    else:
        ts = S                      # tiny sequence: single full-extent block

    grid = (pl.cdiv(S, ts),)
    compiler_params = pltpu.CompilerParams(
        dimension_semantics=("parallel",),     # shards seq tiles on v7x's 2 TCs
        vmem_limit_bytes=48 * _MIB,            # explicit; fits every generation
    )
    cost = pl.CostEstimate(
        flops=S * B * D,
        transcendentals=0,
        bytes_accessed=(2 * S * B * D + S * D) * itemsize,
    )

    use_flat = (B < 8) or (D % 128 != 0)

    if use_flat:
        # Collapse (B, D) onto the lane axis: x -> (S, B*D) is a free reshape
        # of a contiguous buffer; output stores become lane-dense even for
        # tiny B / D.  pe is broadcast over batch inside the kernel.
        x2 = x.reshape(S, B * D)
        pe2 = pe.reshape(L, D)
        if S < 8:
            # Tiny sequence: use full-extent blocks; this S*D slice is negligible.
            pe2 = pe2[:S]
        out = pl.pallas_call(
            functools.partial(_add_pe_flat_kernel, batch=B),
            out_shape=jax.ShapeDtypeStruct((S, B * D), x.dtype),
            grid_spec=pltpu.PrefetchScalarGridSpec(
                num_scalar_prefetch=0,
                grid=grid,
                in_specs=[
                    pl.BlockSpec((ts, B * D), lambda i: (i, 0)),
                    pl.BlockSpec((ts, D), lambda i: (i, 0)),
                ],
                out_specs=pl.BlockSpec((ts, B * D), lambda i: (i, 0)),
            ),
            compiler_params=compiler_params,
            cost_estimate=cost,
        )(x2, pe2)
        return out.reshape(S, B, D)

    # Large-batch path: block = (ts, B, D).  Last two block dims equal the full
    # (B, D) extents (B >= 8, D % 128 == 0 -> fully dense sublanes/lanes).
    # pe stays the full (max_len, 1, D) buffer; only blocks 0..grid-1 are read.
    # TODO(synk): fuse neighboring elementwise ops (embedding * sqrt(d_model),
    # dropout via pltpu.prng_*) into this streaming pass, and/or compute pe
    # in-kernel (iota + sin/cos on the idle EUP) for very small batch; also an
    # opt-in donated/in-place variant (input_output_aliases + donate_argnums).
    return pl.pallas_call(
        _add_pe_3d_kernel,
        out_shape=jax.ShapeDtypeStruct((S, B, D), x.dtype),
        grid_spec=pltpu.PrefetchScalarGridSpec(
            num_scalar_prefetch=0,
            grid=grid,
            in_specs=[
                pl.BlockSpec((ts, B, D), lambda i: (i, 0, 0)),
                pl.BlockSpec((ts, 1, D), lambda i: (i, 0, 0)),
            ],
            out_specs=pl.BlockSpec((ts, B, D), lambda i: (i, 0, 0)),
        ),
        compiler_params=compiler_params,
        cost_estimate=cost,
    )(x, pe)


if __name__ == "__main__":
    # Small shapes consistent with the module: seq=8, batch=2, d_model=32.
    S, B, D = 8, 2, 32
    max_len = 64

    key = jax.random.PRNGKey(0)
    pe = make_positional_encoding(D, max_len=max_len, dtype=jnp.float32)

    # 1) Main path: small batch / small d_model -> lane-dense flat kernel.
    x = jax.random.normal(key, (S, B, D), dtype=jnp.float32)
    out = jax.block_until_ready(positional_encoding_forward(x, pe))
    ref = x + pe[:S]
    assert out.shape == (S, B, D)
    assert jnp.allclose(out, ref, atol=1e-6), "mismatch vs reference (flat path)"

    # 2) Ragged sequence tiling (grid = 3, masked tail block).
    x_r = jax.random.normal(jax.random.PRNGKey(1), (20, B, D), dtype=jnp.float32)
    out_r = jax.block_until_ready(positional_encoding_forward(x_r, pe, tile_s=8))
    assert jnp.allclose(out_r, x_r + pe[:20], atol=1e-6), "mismatch (ragged tile)"

    # 3) Tiny unaligned sequence (S < 8) -> single full-extent block.
    x_s = jax.random.normal(jax.random.PRNGKey(2), (5, B, D), dtype=jnp.float32)
    out_s = jax.block_until_ready(positional_encoding_forward(x_s, pe))
    assert jnp.allclose(out_s, x_s + pe[:5], atol=1e-6), "mismatch (S < 8 path)"

    # 4) Large batch / 128-aligned d_model -> dense (ts, B, D) path.
    pe_big = make_positional_encoding(128, max_len=max_len, dtype=jnp.float32)
    x_b = jax.random.normal(jax.random.PRNGKey(3), (16, 8, 128), dtype=jnp.float32)
    out_b = jax.block_until_ready(positional_encoding_forward(x_b, pe_big))
    assert jnp.allclose(out_b, x_b + pe_big[:16], atol=1e-6), "mismatch (3D path)"

    print("KERNEL_OK")
</pallas_src>

<mosaic_0001>
module attributes {stable_mosaic.version = 11 : i64} {
  func.func @_add_pe_flat_kernel(%arg0: i32, %arg1: memref<8x64xf32, #tpu.memory_space<vmem>>, %arg2: memref<8x32xf32, #tpu.memory_space<vmem>>, %arg3: memref<8x64xf32, #tpu.memory_space<vmem>>) attributes {dimension_semantics = [#tpu.dimension_semantics<parallel>], iteration_bounds = array<i64: 1>, scalar_prefetch = 0 : i64, scratch_operands = 0 : i64, tpu.core_type = #tpu.core_type<tc>, window_params = [{transform_indices = @transform_0, window_bounds = array<i64: 8, 64>}, {transform_indices = @transform_1, window_bounds = array<i64: 8, 32>}, {transform_indices = @transform_2, window_bounds = array<i64: 8, 64>}]} {
    %c0 = arith.constant 0 : index
    %c0_0 = arith.constant 0 : index
    %0 = vector.load %arg2[%c0, %c0_0] : memref<8x32xf32, #tpu.memory_space<vmem>>, vector<8x32xf32>
    %1 = tpu.concatenate %0, %0 in 1 : vector<8x32xf32>, vector<8x32xf32> -> vector<8x64xf32>
    %c0_1 = arith.constant 0 : index
    %c0_2 = arith.constant 0 : index
    %2 = vector.load %arg1[%c0_1, %c0_2] : memref<8x64xf32, #tpu.memory_space<vmem>>, vector<8x64xf32>
    %3 = arith.addf %2, %1 : vector<8x64xf32>
    %c0_3 = arith.constant 0 : index
    %c0_4 = arith.constant 0 : index
    %4 = vector.load %arg3[%c0_3, %c0_4] : memref<8x64xf32, #tpu.memory_space<vmem>>, vector<8x64xf32>
    tpu.vector_store %arg3[%c0_3, %c0_4], %3 {strides = array<i32>} : memref<8x64xf32, #tpu.memory_space<vmem>>, vector<8x64xf32>,
    return
  }
  func.func @transform_0(%arg0: i32) -> (i32, i32) {
    %c0_i32 = arith.constant 0 : i32
    %c0_i32_0 = arith.constant 0 : i32
    return %arg0, %c0_i32 : i32, i32
  }
  func.func @transform_1(%arg0: i32) -> (i32, i32) {
    %c0_i32 = arith.constant 0 : i32
    %c0_i32_0 = arith.constant 0 : i32
    return %arg0, %c0_i32 : i32, i32
  }
  func.func @transform_2(%arg0: i32) -> (i32, i32) {
    %c0_i32 = arith.constant 0 : i32
    %c0_i32_0 = arith.constant 0 : i32
    return %arg0, %c0_i32 : i32, i32
  }
}

</mosaic_0001>

<bundles_post_ra>
// kernel: tpu_custom_call.1
= control target key start
LH: loop header
LB: loop body
LE: loop exit
PB: predicated region body
PF: predicated region fallthrough
CT: control target
= control target key end

     0   :  { %s98_s0 = inlined_call_operand.vmem [shape: f32[8,64], index: 0, kind: input, shape index: {}]   ;;  %s99_s1 = inlined_call_operand.vmem [shape: f32[64,32], index: 1, kind: input, shape index: {}]   ;;  %s100_s2 = inlined_call_operand.hbm [shape: f32[8,64], index: 2, kind: output, shape index: {}]  }
   0x1   :  { %v12_v0 = vld [vmem:[%s99_s1] sm:$0xff] }
   0x2   :  { %7 = vsyncpa [#allocation3], 0  ;;  %s63_s11 = smov 32   ;;  %vm17_vm0 = vcmask 261120   ;;  %v19_v1 = vld [vmem:[%s98_s0] sm:$0xff]  ;;  %s64_s14 = smov [#allocation2]  }
   0x3   :  { %14 = vrot.lane.b32.xlu0 %v12_v0, %s63_s11  ;;  %s29_s15 = sshll.u32 %s64_s14, 4  ;;  %vm21_vm1 = vcmask 523264   ;;  %s30_s15 = int_to_ptr.vmem [resolvable:$true] %s29_s15 }
   0x4   :  { %s39_s16 = scalar_lea.vmem %s30_s15, 128  ;;  %p44_p1 = scmp.lt.s32.totalorder %s30_s15, %s30_s15 }
   0x5   :  { %p40_p0 = scmp.ne.s32.totalorder %s30_s15, %s39_s16  ;;  %p45_p2 = scmp.lt.s32.totalorder %s39_s16, %s39_s16 }
   0x7   :  { %p46_p3 = por %p45_p2, %p44_p1 }
   0x9   :  { %p47_p4 = pnand %p46_p3, %p40_p0 }
  0x75   :  { %v15_v2 = vpop.permute.xlu0 %14 }
  0x76   :  { %v18_v3 = vsel %vm17_vm0, %v12_v0, %v15_v2 }
  0x77   :  { %v20_v4 = vadd.f32 %v19_v1, %v18_v3 }
  0x79   :  { %22 = vst.msk [vmem:[#allocation2] sm:$0xff] %vm21_vm1, %v20_v4 }
  0x7a   :  { %50 = shalt.err (!%p47_p4)
}
  0x7b   :  { %s51_s18 = scalar_lea.hbm %s100_s2, 128 }
  0x7c   :  { %p52_p5 = scmp.ne.s32.totalorder %s100_s2, %s51_s18  ;;  %p55_p6 = scmp.lt.u32.totalorder %s51_s18, %s100_s2 }
  0x7e   :  { %p57_p7 = pnand %p55_p6, %p52_p5 }
  0x80   :  { %60 = shalt.err (!%p57_p7)
}
  0x81   :  { %32 = dma.vmem_to_hbm [thread:$0]  %s30_s15, 128, %s100_s2, [#allocation3]  }
  0x82   :  { %61 = dma.done.wait [#allocation3], 128  }
  0x83   :  { %62 = vsyncadd [#allocation3], 4294967168 }
  0x84   :  { %36 = vsyncpa [#allocation3], 1 }

</bundles_post_ra>
